<compile_context>
chip_gen: v5e
topology: v5e:2x2
jax: 0.10.0
libtpu: 0.0.40
codegen_flags: <defaults>
</compile_context>

<pallas_src>
import functools
import math

import jax
import jax.numpy as jnp
from jax import lax
from jax.experimental import pallas as pl
from jax.experimental.pallas import tpu as pltpu


def _i32(v: int) -> int:
    """Reinterpret a uint32 literal as a signed int32 Python int."""
    v &= 0xFFFFFFFF
    return v - (1 << 32) if v >= (1 << 31) else v


_MIX_M1 = _i32(0x7FEB352D)
_MIX_M2 = _i32(0x846CA68B)
_GOLDEN = _i32(0x9E3779B9)


def _mix32(x):
    """lowbias32 integer hash with exact uint32 semantics on int32 values.

    (x >> k) & mask emulates a logical right shift; int32 multiply wraps
    (two's complement), which is bit-identical to uint32 multiply.
    """
    x = x ^ ((x >> 16) & 0xFFFF)
    x = x * _MIX_M1
    x = x ^ ((x >> 15) & 0x1FFFF)
    x = x * _MIX_M2
    x = x ^ ((x >> 16) & 0xFFFF)
    return x


def _build_pe_table(d_model: int, max_len: int) -> jnp.ndarray:
    """Deterministic positional-encoding buffer, shape (max_len, 1, d_model)."""
    position = jnp.arange(max_len, dtype=jnp.float32)[:, None]            # (max_len, 1)
    div_term = jnp.exp(jnp.arange(0, d_model, 2, dtype=jnp.float32)
                       * (-math.log(10000.0) / d_model))                  # (ceil(d/2),)
    ang = position * div_term                                             # (max_len, ceil(d/2))
    pe = jnp.zeros((max_len, d_model), jnp.float32)
    pe = pe.at[:, 0::2].set(jnp.sin(ang))
    pe = pe.at[:, 1::2].set(jnp.cos(ang[:, : d_model // 2]))
    return pe[:, None, :]                                                 # (max_len, 1, d_model)


def _pe_dropout_kernel(seed_ref, x_ref, pe_ref, o_ref, *, p: float, training: bool):
    # x_ref : (TS, B, D) VMEM    pe_ref: (TS, 1, D) VMEM    o_ref: (TS, B, D) VMEM
    x = x_ref[...].astype(jnp.float32)
    pe = pe_ref[...].astype(jnp.float32)
    y = x + pe                                    # sublane broadcast over the batch dim

    if training and p > 0.0:
        if p >= 1.0:
            y = jnp.zeros_like(y)
        else:
            ts, b, d = x.shape                    # static block dims (b == B, d == D)
            # Counter-based PRNG: hash of (global element index, seed).  The mask is
            # independent of the tiling, and every tile gets decorrelated bits.
            row0 = pl.program_id(0) * ts
            s_idx = lax.broadcasted_iota(jnp.int32, (ts, b, d), 0) + row0
            b_idx = lax.broadcasted_iota(jnp.int32, (ts, b, d), 1)
            d_idx = lax.broadcasted_iota(jnp.int32, (ts, b, d), 2)
            lin = (s_idx * b + b_idx) * d + d_idx
            h = _mix32(lin + seed_ref[0] * _GOLDEN)
            # 23 uniform bits -> u in [0, 1); keep with probability (1 - p).
            u = (h & 0x7FFFFF).astype(jnp.float32) * jnp.float32(1.0 / (1 << 23))
            keep_scale = jnp.where(u >= jnp.float32(p),
                                   jnp.float32(1.0 / (1.0 - p)),
                                   jnp.float32(0.0))
            y = y * keep_scale                    # single fused select + scale multiply

    o_ref[...] = y.astype(o_ref.dtype)


def _pick_block_rows(S, B, D, itemsize,
                     budget_bytes=16 * 1024 * 1024, max_rows=1024):
    """Rows per seq-tile: largest multiple of 8 whose double-buffered set fits the budget."""
    pad_b = -(-B // 8) * 8            # sublane padding of the (B, D) slab
    pad_d = -(-D // 128) * 128        # lane padding
    per_row = 2 * (2 * pad_b + 8) * pad_d * itemsize   # 2 buffers x (x + out + pe)
    ts = max(1, budget_bytes // per_row)
    ts = min(ts, max_rows, S)
    if ts >= S:
        return S
    return max(8, (ts // 8) * 8)


def positional_encoding_forward(x, pe, *, p: float = 0.1, seed: int = 0,
                                training: bool = True, block_rows=None):
    """x: (S, B, D); pe: (max_len, 1, D) as registered by the module. Returns (S, B, D)."""
    S, B, D = x.shape
    pe_slice = pe[:S]                                   # (S, 1, D), plain-JAX glue

    if block_rows is None:
        ts = _pick_block_rows(S, B, D, x.dtype.itemsize)
    else:
        ts = min(int(block_rows), S)
        ts = S if ts >= S else max(8, (ts // 8) * 8)
    grid = (pl.cdiv(S, ts),)

    seed_arr = jnp.asarray([seed], dtype=jnp.int32)
    kernel = functools.partial(_pe_dropout_kernel, p=float(p), training=bool(training))

    return pl.pallas_call(
        kernel,
        out_shape=jax.ShapeDtypeStruct((S, B, D), x.dtype),
        grid_spec=pltpu.PrefetchScalarGridSpec(
            num_scalar_prefetch=1,                      # seed lands in SMEM
            grid=grid,
            in_specs=[
                pl.BlockSpec((ts, B, D), lambda i, seed_ref: (i, 0, 0)),
                pl.BlockSpec((ts, 1, D), lambda i, seed_ref: (i, 0, 0)),
            ],
            out_specs=pl.BlockSpec((ts, B, D), lambda i, seed_ref: (i, 0, 0)),
        ),
        compiler_params=pltpu.CompilerParams(
            dimension_semantics=("parallel",),          # megacore-shard seq tiles (v7x)
        ),
        # Note: when the caller donates x, input_output_aliases={1: 0} would halve the
        # HBM footprint (no bandwidth change); left off here to keep the demo eager-safe.
    )(seed_arr, x, pe_slice)


if __name__ == "__main__":
    d_model = 32
    max_len = 5000
    dropout_p = 0.1

    pe = _build_pe_table(d_model, max_len)

    # Small shape matching the module's (seq, batch, d_model) convention.
    seq_len, batch = 8, 2
    x = jax.random.normal(jax.random.PRNGKey(0), (seq_len, batch, d_model), dtype=jnp.float32)

    # Eval mode: exact reference check (out == x + pe[:S]).
    out_eval = jax.block_until_ready(
        positional_encoding_forward(x, pe, p=dropout_p, training=False))
    ref_eval = x + pe[:seq_len]
    assert out_eval.shape == (seq_len, batch, d_model)
    assert bool(jnp.allclose(out_eval, ref_eval, rtol=1e-5, atol=1e-5))

    # Training mode: every element is either dropped (0) or (x + pe) / (1 - p).
    out_train = jax.block_until_ready(
        positional_encoding_forward(x, pe, p=dropout_p, seed=123, training=True))
    scaled = ref_eval / (1.0 - dropout_p)
    ok = (jnp.isclose(out_train, 0.0, atol=1e-6)
          | jnp.isclose(out_train, scaled, rtol=1e-5, atol=1e-6))
    assert bool(jnp.all(ok))

    # Larger sequence with a forced small tile to exercise the multi-step pipelined grid.
    seq2 = 1024
    x2 = jax.random.normal(jax.random.PRNGKey(1), (seq2, batch, d_model), dtype=jnp.float32)
    out2 = jax.block_until_ready(
        positional_encoding_forward(x2, pe, p=dropout_p, seed=7, training=True,
                                    block_rows=128))
    ref2 = (x2 + pe[:seq2]) / (1.0 - dropout_p)
    ok2 = (jnp.isclose(out2, 0.0, atol=1e-6)
           | jnp.isclose(out2, ref2, rtol=1e-5, atol=1e-6))
    assert bool(jnp.all(ok2))
    keep_frac = float(jnp.mean((out2 != 0.0).astype(jnp.float32)))
    assert 0.80 < keep_frac < 0.97, keep_frac

    print("KERNEL_OK")
</pallas_src>

<mosaic_0001>
module attributes {stable_mosaic.version = 11 : i64} {
  func.func @_pe_dropout_kernel(%arg0: i32, %arg1: memref<1xi32, #tpu.memory_space<smem>>, %arg2: memref<8x2x32xf32, #tpu.memory_space<vmem>>, %arg3: memref<8x1x32xf32, #tpu.memory_space<vmem>>, %arg4: memref<8x2x32xf32, #tpu.memory_space<vmem>>) attributes {dimension_semantics = [#tpu.dimension_semantics<parallel>], iteration_bounds = array<i64: 1>, scalar_prefetch = 1 : i64, scratch_operands = 0 : i64, tpu.core_type = #tpu.core_type<tc>, window_params = [{transform_indices = @transform_0, window_bounds = array<i64: 8, 2, 32>}, {transform_indices = @transform_1, window_bounds = array<i64: 8, 1, 32>}, {transform_indices = @transform_2, window_bounds = array<i64: 8, 2, 32>}]} {
    %c0 = arith.constant 0 : index
    %c0_0 = arith.constant 0 : index
    %c0_1 = arith.constant 0 : index
    %0 = vector.load %arg2[%c0, %c0_0, %c0_1] : memref<8x2x32xf32, #tpu.memory_space<vmem>>, vector<8x2x32xf32>
    %c0_2 = arith.constant 0 : index
    %c0_3 = arith.constant 0 : index
    %c0_4 = arith.constant 0 : index
    %1 = vector.load %arg3[%c0_2, %c0_3, %c0_4] : memref<8x1x32xf32, #tpu.memory_space<vmem>>, vector<8x1x32xf32>
    %2 = vector.broadcast %1 : vector<8x1x32xf32> to vector<8x2x32xf32>
    %3 = arith.addf %0, %2 : vector<8x2x32xf32>
    %c0_5 = arith.constant 0 : index
    %c0_6 = arith.constant 0 : index
    %c0_7 = arith.constant 0 : index
    %4 = vector.load %arg4[%c0_5, %c0_6, %c0_7] : memref<8x2x32xf32, #tpu.memory_space<vmem>>, vector<8x2x32xf32>
    tpu.vector_store %arg4[%c0_5, %c0_6, %c0_7], %3 {strides = array<i32>} : memref<8x2x32xf32, #tpu.memory_space<vmem>>, vector<8x2x32xf32>,
    return
  }
  func.func @transform_0(%arg0: i32, %arg1: memref<1xi32, #tpu.memory_space<smem>>) -> (i32, i32, i32) {
    %c0_i32 = arith.constant 0 : i32
    %c0_i32_0 = arith.constant 0 : i32
    %c0_i32_1 = arith.constant 0 : i32
    return %arg0, %c0_i32, %c0_i32_0 : i32, i32, i32
  }
  func.func @transform_1(%arg0: i32, %arg1: memref<1xi32, #tpu.memory_space<smem>>) -> (i32, i32, i32) {
    %c0_i32 = arith.constant 0 : i32
    %c0_i32_0 = arith.constant 0 : i32
    %c0_i32_1 = arith.constant 0 : i32
    return %arg0, %c0_i32, %c0_i32_0 : i32, i32, i32
  }
  func.func @transform_2(%arg0: i32, %arg1: memref<1xi32, #tpu.memory_space<smem>>) -> (i32, i32, i32) {
    %c0_i32 = arith.constant 0 : i32
    %c0_i32_0 = arith.constant 0 : i32
    %c0_i32_1 = arith.constant 0 : i32
    return %arg0, %c0_i32, %c0_i32_0 : i32, i32, i32
  }
}

</mosaic_0001>

<bundles_post_ra>
// kernel: tpu_custom_call.1
= control target key start
LH: loop header
LB: loop body
LE: loop exit
PB: predicated region body
PF: predicated region fallthrough
CT: control target
= control target key end

     0   :  { %9 = vsyncpa [#allocation5], 0  ;;  %s273_s0 = inlined_call_operand.<no memory space> [shape: s32[1], index: 0, kind: input, shape index: {}]   ;;  %s274_s1 = inlined_call_operand.hbm [shape: f32[8,2,32], index: 1, kind: input, shape index: {}]   ;;  %s275_s2 = inlined_call_operand.hbm [shape: f32[8,1,32], index: 2, kind: input, shape index: {}]   ;;  %s276_s3 = inlined_call_operand.hbm [shape: f32[8,2,32], index: 3, kind: output, shape index: {}]  }
   0x1   :  { %10 = vsyncpa [#allocation8], 0 }
   0x2   :  { %11 = vsyncpa [#allocation6], 0  ;;  %s16_s14 = sshll.u32 %s274_s1, 4  ;;  %s216_s15 = smov [#allocation4]   ;;  %s17_s14 = int_to_ptr.hbm [resolvable:$true] %s16_s14 }
   0x3   :  { %s18_s16 = sshll.u32 %s216_s15, 4  ;;  %s29_s18 = sshll.u32 %s275_s2, 4  ;;  %s19_s16 = int_to_ptr.vmem [resolvable:$true] %s18_s16  ;;  %s30_s18 = int_to_ptr.hbm [resolvable:$true] %s29_s18 }
   0x4   :  { %s217_s19 = smov 32   ;;  %s218_s20 = smov 2  }
   0x5   :  { %24 = dma.hbm_to_vmem [thread:$0]  %s17_s14, 256, %s19_s16, [#allocation5], %s217_s19, %s217_s19, %s218_s20  }
   0x6   :  { %s219_s21 = smov [#allocation7]   ;;  %s220_s23 = smov 16  }
   0x7   :  { %s31_s22 = sshll.u32 %s219_s21, 4  ;;  %s221_s1 = smov 1   ;;  %s32_s22 = int_to_ptr.vmem [resolvable:$true] %s31_s22 }
   0x8   :  { %37 = dma.hbm_to_vmem [thread:$0]  %s30_s18, 128, %s32_s22, [#allocation8], %s220_s23, %s220_s23, %s221_s1  }
   0x9   :  { %210 = dma.done.wait [#allocation5], 256  }
   0xa   :  { %211 = vsyncadd [#allocation5], 4294967040 }
   0xb   :  { %212 = dma.done.wait [#allocation8], 128  }
   0xc   :  { %213 = vsyncadd [#allocation8], 4294967168  ;;  %vm94_vm0 = vcmask 254976   ;;  %s222_s24 = smov [#allocation9]   ;;  %s109_s27 = sshll.u32 %s276_s3, 4  ;;  %s110_s27 = int_to_ptr.hbm [resolvable:$true] %s109_s27 }
   0xd   :  { %s252_s2 = sshll.u32 %s222_s24, 4  ;;  %v46_v0 = vld [vmem:[#allocation4] sm:$0x3]  ;;  %v130_v1 = vld [vmem:[#allocation7] ss:$0 sm:$0xff]  ;;  %s108_s2 = int_to_ptr.vmem [resolvable:$true] %s252_s2 }
   0xe   :  { %v47_v2 = vld [vmem:[#allocation4 + $0x2] sm:$0x3]  ;;  %v131_v3 = vld [vmem:[#allocation7 + $0x1] ss:$0 sm:$0xff]  ;;  %v86_v4 = vadd.f32 %v130_v1, %v46_v0  ;;  %v48_v5 = vld [vmem:[#allocation4 + $0x4] sm:$0x3] }
   0xf   :  { %v132_v6 = vld [vmem:[#allocation7 + $0x2] ss:$0 sm:$0xff]  ;;  %v87_v7 = vadd.f32 %v131_v3, %v47_v2  ;;  %v49_v8 = vld [vmem:[#allocation4 + $0x6] sm:$0x3]  ;;  %v133_v9 = vld [vmem:[#allocation7 + $0x3] ss:$0 sm:$0xff] }
  0x10   :  { %95 = vst.msk [vmem:[#allocation9] sm:$0x3] %vm94_vm0, %v86_v4  ;;  %v88_v10 = vadd.f32 %v132_v6, %v48_v5  ;;  %v50_v11 = vld [vmem:[#allocation4 + $0x8] sm:$0x3]  ;;  %v89_v12 = vadd.f32 %v133_v9, %v49_v8  ;;  %v134_v13 = vld [vmem:[#allocation7 + $0x4] ss:$0 sm:$0xff] }
  0x11   :  { %96 = vst.msk [vmem:[#allocation9 + $0x2] sm:$0x3] %vm94_vm0, %v87_v7  ;;  %v51_v14 = vld [vmem:[#allocation4 + $0xa] sm:$0x3]  ;;  %v135_v15 = vld [vmem:[#allocation7 + $0x5] ss:$0 sm:$0xff]  ;;  %v90_v16 = vadd.f32 %v134_v13, %v50_v11 }
  0x12   :  { %97 = vst.msk [vmem:[#allocation9 + $0x4] sm:$0x3] %vm94_vm0, %v88_v10  ;;  %v52_v17 = vld [vmem:[#allocation4 + $0xc] sm:$0x3]  ;;  %v91_v18 = vadd.f32 %v135_v15, %v51_v14  ;;  %v136_v19 = vld [vmem:[#allocation7 + $0x6] ss:$0 sm:$0xff] }
  0x13   :  { %98 = vst.msk [vmem:[#allocation9 + $0x6] sm:$0x3] %vm94_vm0, %v89_v12  ;;  %v53_v20 = vld [vmem:[#allocation4 + $0xe] sm:$0x3]  ;;  %v137_v21 = vld [vmem:[#allocation7 + $0x7] ss:$0 sm:$0xff]  ;;  %v92_v22 = vadd.f32 %v136_v19, %v52_v17 }
  0x14   :  { %99 = vst.msk [vmem:[#allocation9 + $0x8] sm:$0x3] %vm94_vm0, %v90_v16  ;;  %v93_v23 = vadd.f32 %v137_v21, %v53_v20 }
  0x15   :  { %100 = vst.msk [vmem:[#allocation9 + $0xa] sm:$0x3] %vm94_vm0, %v91_v18 }
  0x16   :  { %101 = vst.msk [vmem:[#allocation9 + $0xc] sm:$0x3] %vm94_vm0, %v92_v22 }
  0x17   :  { %102 = vst.msk [vmem:[#allocation9 + $0xe] sm:$0x3] %vm94_vm0, %v93_v23 }
  0x18   :  { %115 = dma.vmem_to_hbm [thread:$0]  %s108_s2, 256, %s110_s27, [#allocation6], %s217_s19, %s217_s19, %s218_s20  }
  0x19   :  { %214 = dma.done.wait [#allocation6], 256  }
  0x1a   :  { %215 = vsyncadd [#allocation6], 4294967040 }
  0x1b   :  { %120 = vsyncpa [#allocation5], 1 }
  0x1c   :  { %121 = vsyncpa [#allocation8], 1 }
  0x1d   :  { %122 = vsyncpa [#allocation6], 1 }

</bundles_post_ra>
